<compile_context>
chip_gen: v7x
topology: tpu7x:2x2x1
jax: 0.10.0
libtpu: 0.0.40
codegen_flags: <defaults>
</compile_context>

<pallas_src>
import jax
import jax.numpy as jnp
from jax import lax
from jax.experimental import pallas as pl
from jax.experimental.pallas import tpu as pltpu

# ---------------------------------------------------------------------------
# Config (small, consistent with SequenceLabeling.__init__)
# ---------------------------------------------------------------------------
HIDDEN = 32            # hidden_size == Config.embed_size
CLASS_NUMS = 4         # class_nums
PROMPT_LEN = 4         # Config.prompt_length (number of [T] slots)
VOCAB = 64             # surrogate vocab (classes live at ids 1..CLASS_NUMS)
PROMPT_TOKENS = 16     # tokens per per-position prompt sentence (L)
SEQ_LEN = 3            # labeling steps (outer viterbi loop)
FFN = 4 * HIDDEN

PLB_ID = 60            # tokenizer.convert_tokens_to_ids('[PLB]')
T_ID = 61              # tokenizer.convert_tokens_to_ids('[T]')
MASK_ID = 62           # tokenizer.mask_token_id
IGNORE = -100

NEG_BIG = 1e30


# ---------------------------------------------------------------------------
# Fused per-(sequence, step) kernel: embed fixup -> QKV -> attn -> FFN ->
# MLM head -> loss + class score + in-kernel [PLB] argmax feedback.
# ---------------------------------------------------------------------------
def _seq_kernel(base_ref, plb_ref, bias_ref, msel_ref, lab_ref,      # per-step
                cls_ref, wqkv_ref, bqkv_ref, wo_ref, bo_ref,         # weights
                ff1_ref, bf1_ref, ff2_ref, bf2_ref, wm_ref, bm_ref,
                trills_ref, loss_ref,                                # outputs
                prev_emb):                                           # scratch
    s = pl.program_id(1)

    @pl.when(s == 0)
    def _():
        prev_emb[...] = jnp.zeros_like(prev_emb)      # no [PLB] substitution at step 0
        loss_ref[...] = jnp.zeros_like(loss_ref)
        trills_ref[...] = jnp.zeros_like(trills_ref)

    # --- dynamic [PLB] substitution: previous predicted-label word embedding ---
    embeds = base_ref[...] + plb_ref[...] * prev_emb[...]            # [L, H]

    # --- fused QKV projection ---
    qkv = jnp.dot(embeds, wqkv_ref[...],
                  preferred_element_type=jnp.float32) + bqkv_ref[...]  # [L, 3H]
    q = qkv[:, 0:HIDDEN]
    k = qkv[:, HIDDEN:2 * HIDDEN]
    v = qkv[:, 2 * HIDDEN:3 * HIDDEN]

    # --- single-head self-attention, additive key mask ---
    scale = 1.0 / (HIDDEN ** 0.5)
    sc = jnp.dot(q, k.T, preferred_element_type=jnp.float32) * scale
    sc = sc + bias_ref[...]                                          # [L, L] + [1, L]
    m = jnp.max(sc, axis=-1, keepdims=True)
    p = jnp.exp(sc - m)
    p = p * pl.reciprocal(jnp.sum(p, axis=-1, keepdims=True), approx=True)
    attn = jnp.dot(p, v, preferred_element_type=jnp.float32)         # [L, H]

    # --- output proj + residual, FFN + residual, MLM head ---
    x = embeds + jnp.dot(attn, wo_ref[...],
                         preferred_element_type=jnp.float32) + bo_ref[...]
    h = jnp.maximum(jnp.dot(x, ff1_ref[...],
                            preferred_element_type=jnp.float32) + bf1_ref[...], 0.0)
    x = x + jnp.dot(h, ff2_ref[...],
                    preferred_element_type=jnp.float32) + bf2_ref[...]
    logits = jnp.dot(x, wm_ref[...],
                     preferred_element_type=jnp.float32) + bm_ref[...]   # [L, V]

    # --- masked-LM cross entropy (label one-hot pre-scaled by 1/num_valid) ---
    lm = jnp.max(logits, axis=-1, keepdims=True)
    lse = lm + jnp.log(jnp.sum(jnp.exp(logits - lm), axis=-1, keepdims=True))
    nll = (lse - logits) * lab_ref[...]                              # [L, V]
    row = jnp.sum(nll, axis=-1, keepdims=True)                       # [L, 1]
    loss_ref[...] = loss_ref[...] + jnp.sum(row, axis=0, keepdims=True)

    # --- class score at the first [MASK] position (vocab ids 1..CLASS_NUMS) ---
    mask_logits = jnp.sum(msel_ref[...] * logits, axis=0, keepdims=True)   # [1, V]
    score = mask_logits[:, 1:1 + CLASS_NUMS]                         # [1, C]

    # write row s of the resident [S, C] output (select-write, no dynamic store)
    S_full = trills_ref.shape[0]
    row_iota = lax.broadcasted_iota(jnp.int32, (S_full, 1), 0)
    trills_ref[...] = jnp.where(row_iota == s, score, trills_ref[...])

    # --- in-kernel first-argmax -> predicted-label embedding for next step ---
    iota_c = lax.broadcasted_iota(jnp.int32, (1, CLASS_NUMS), 1).astype(jnp.float32)
    mx = jnp.max(score, axis=-1, keepdims=True)
    first = jnp.min(jnp.where(score >= mx, iota_c, float(CLASS_NUMS)),
                    axis=-1, keepdims=True)                          # [1,1] first argmax
    iota_col = lax.broadcasted_iota(jnp.int32, (CLASS_NUMS, 1), 0).astype(jnp.float32)
    oh_col = (jnp.abs(iota_col - first) < 0.5).astype(jnp.float32)   # [C, 1]
    prev_emb[...] = jnp.sum(oh_col * cls_ref[...], axis=0, keepdims=True)  # [1, H]


def _run_fused(base, plb_m, bias, msel, lab, cls_emb,
               wqkv, bqkv, wo, bo, ff1, bf1, ff2, bf2, wm, bm):
    B, S, L, H = base.shape
    V = wm.shape[1]

    step4 = lambda b, s: (b, s, 0, 0)
    const2 = lambda b, s: (0, 0)

    return pl.pallas_call(
        _seq_kernel,
        out_shape=(jax.ShapeDtypeStruct((B, S, CLASS_NUMS), jnp.float32),
                   jax.ShapeDtypeStruct((B, 1, 1), jnp.float32)),
        grid_spec=pltpu.PrefetchScalarGridSpec(
            num_scalar_prefetch=0,
            grid=(B, S),
            in_specs=[
                pl.BlockSpec((None, None, L, H), step4),        # base embeds
                pl.BlockSpec((None, None, L, 1), step4),        # [PLB] mask
                pl.BlockSpec((None, None, 1, L), step4),        # additive attn bias
                pl.BlockSpec((None, None, L, 1), step4),        # [MASK]-row selector
                pl.BlockSpec((None, None, L, V), step4),        # label one-hot / count
                pl.BlockSpec((CLASS_NUMS, H), const2),          # class-label embeddings
                pl.BlockSpec((H, 3 * H), const2),               # fused QKV weight
                pl.BlockSpec((1, 3 * H), const2),
                pl.BlockSpec((H, H), const2),                   # attn output proj
                pl.BlockSpec((1, H), const2),
                pl.BlockSpec((H, FFN), const2),                 # FFN
                pl.BlockSpec((1, FFN), const2),
                pl.BlockSpec((FFN, H), const2),
                pl.BlockSpec((1, H), const2),
                pl.BlockSpec((H, V), const2),                   # MLM head
                pl.BlockSpec((1, V), const2),
            ],
            out_specs=(
                pl.BlockSpec((None, S, CLASS_NUMS), lambda b, s: (b, 0, 0)),
                pl.BlockSpec((None, 1, 1), lambda b, s: (b, 0, 0)),
            ),
            scratch_shapes=[pltpu.VMEM((1, H), jnp.float32)],   # prev predicted-label embedding
        ),
        compiler_params=pltpu.CompilerParams(
            dimension_semantics=("parallel", "arbitrary"),
            vmem_limit_bytes=16 * 1024 * 1024,
        ),
    )(base, plb_m, bias, msel, lab, cls_emb,
      wqkv, bqkv, wo, bo, ff1, bf1, ff2, bf2, wm, bm)


# ---------------------------------------------------------------------------
# Deterministic parameter init (shapes from SequenceLabeling.__init__)
# ---------------------------------------------------------------------------
def init_params(key):
    def dense(k, fan_in, fan_out):
        kw, kb = jax.random.split(k)
        w = jax.random.normal(kw, (fan_in, fan_out), jnp.float32) * 0.02
        b = jax.random.normal(kb, (fan_out,), jnp.float32) * 0.02
        return w, b

    ks = jax.random.split(key, 12)
    p = {}
    p['word_emb'] = jax.random.normal(ks[0], (VOCAB, HIDDEN), jnp.float32) * 0.02
    p['prompt_emb'] = jax.random.normal(ks[1], (PROMPT_LEN, HIDDEN), jnp.float32) * 0.02
    # prompt-encoder MLP (original forward computes it and DISCARDS the result;
    # weights kept for parity, dead compute not dispatched)
    p['mlp1_w'], p['mlp1_b'] = dense(ks[2], HIDDEN, HIDDEN)
    p['mlp2_w'], p['mlp2_b'] = dense(ks[3], HIDDEN, HIDDEN)
    # self.fc = nn.Linear(hidden_size, class_nums) -- present but unused in forward()
    p['fc_w'], p['fc_b'] = dense(ks[4], HIDDEN, CLASS_NUMS)
    # surrogate BERT (one attention + FFN block + MLM head)
    p['wq'], p['bq'] = dense(ks[5], HIDDEN, HIDDEN)
    p['wk'], p['bk'] = dense(ks[6], HIDDEN, HIDDEN)
    p['wv'], p['bv'] = dense(ks[7], HIDDEN, HIDDEN)
    p['wo'], p['bo'] = dense(ks[8], HIDDEN, HIDDEN)
    p['ff1_w'], p['ff1_b'] = dense(ks[9], HIDDEN, FFN)
    p['ff2_w'], p['ff2_b'] = dense(ks[10], FFN, HIDDEN)
    p['mlm_w'], p['mlm_b'] = dense(ks[11], HIDDEN, VOCAB)
    return p


# ---------------------------------------------------------------------------
# JAX glue: static precompute + fused kernel + post-processing, all under jit.
# ---------------------------------------------------------------------------
def _precompute(p, ids, attn, labels):
    """Static (prediction-independent) per-step tensors."""
    B, S, L = ids.shape
    raw = p['word_emb'][ids]                                   # [B,S,L,H]

    # [T]-slot substitution with raw prompt embeddings (static)
    t_mask = ids == T_ID
    t_idx = jnp.cumsum(t_mask.astype(jnp.int32), axis=-1) - 1
    gathered = p['prompt_emb'][jnp.clip(t_idx, 0, PROMPT_LEN - 1)]
    base = jnp.where(t_mask[..., None], gathered, raw)

    # [PLB] positions for steps > 0 are filled in-kernel from the previous
    # step's prediction; zero them here and emit a mask.
    step = jnp.arange(S)[None, :, None]
    plb = (ids == PLB_ID) & (step > 0)                         # [B,S,L]
    base = jnp.where(plb[..., None], 0.0, base)
    plb_m = plb.astype(jnp.float32)[..., None]                 # [B,S,L,1]

    # additive attention mask over keys
    bias = ((attn.astype(jnp.float32) - 1.0) * NEG_BIG)[:, :, None, :]   # [B,S,1,L]

    # first [MASK] position selector (column form for sublane-reduce in kernel)
    first_mask = jnp.argmax((ids == MASK_ID).astype(jnp.int32), axis=-1)  # [B,S]
    msel = jax.nn.one_hot(first_mask, L, dtype=jnp.float32)[..., None]    # [B,S,L,1]

    # CrossEntropy(ignore_index=-100) as a pre-scaled one-hot
    valid = labels != IGNORE
    count = jnp.maximum(jnp.sum(valid, axis=-1), 1).astype(jnp.float32)   # [B,S]
    lab = jax.nn.one_hot(jnp.where(valid, labels, 0), VOCAB, dtype=jnp.float32)
    lab = lab * valid[..., None].astype(jnp.float32)
    lab = lab / count[..., None, None]                         # [B,S,L,V]
    return base, plb_m, bias, msel, lab


@jax.jit
def _forward_batched(p, ids, attn, labels):
    B, S, L = ids.shape
    base, plb_m, bias, msel, lab = _precompute(p, ids, attn, labels)

    wqkv = jnp.concatenate([p['wq'], p['wk'], p['wv']], axis=1)           # [H, 3H]
    bqkv = jnp.concatenate([p['bq'], p['bk'], p['bv']], axis=0)[None, :]  # [1, 3H]
    cls_emb = p['word_emb'][1:1 + CLASS_NUMS]                             # [C, H]

    trills, loss_sum = _run_fused(
        base, plb_m, bias, msel, lab, cls_emb,
        wqkv, bqkv, p['wo'], p['bo'][None, :],
        p['ff1_w'], p['ff1_b'][None, :], p['ff2_w'], p['ff2_b'][None, :],
        p['mlm_w'], p['mlm_b'][None, :])

    # best_path = paths[:, argmax(last score)]  (class index, shape [1] per seq)
    best = jnp.argmax(trills[:, -1, :], axis=-1).astype(jnp.int32)[:, None]   # [B,1]
    mean_loss = jnp.mean(loss_sum[:, 0, 0] / S)     # mean over datas of (sum_s / S)
    return trills, best, mean_loss


def forward(p, datas):
    """SequenceLabeling.forward(datas): returns (predict_labels, scores, loss)."""
    ids = jnp.stack([d['input_ids'] for d in datas]).astype(jnp.int32)
    attn = jnp.stack([d['attention_mask'] for d in datas]).astype(jnp.int32)
    labels = jnp.stack([d['labels'] for d in datas]).astype(jnp.int32)
    trills, best, loss = _forward_batched(p, ids, attn, labels)
    total_scores = [trills[b] for b in range(len(datas))]
    total_predict_labels = [best[b] for b in range(len(datas))]
    return total_predict_labels, total_scores, loss


# ---------------------------------------------------------------------------
# Synthetic deterministic data
# ---------------------------------------------------------------------------
def make_data(key):
    kids, klab = jax.random.split(key)
    ids = jax.random.randint(kids, (SEQ_LEN, PROMPT_TOKENS), 1 + CLASS_NUMS, 50,
                             dtype=jnp.int32)
    ids = ids.at[:, 1:1 + PROMPT_LEN].set(T_ID)            # [T] slots
    ids = ids.at[:, 1 + PROMPT_LEN].set(MASK_ID)           # [MASK]
    ids = ids.at[:, 2 + PROMPT_LEN].set(PLB_ID)            # [PLB] placeholder
    attn = jnp.ones((SEQ_LEN, PROMPT_TOKENS), jnp.int32)
    gold = jax.random.randint(klab, (SEQ_LEN,), 1, 1 + CLASS_NUMS, dtype=jnp.int32)
    labels = jnp.full((SEQ_LEN, PROMPT_TOKENS), IGNORE, jnp.int32)
    labels = labels.at[:, 1 + PROMPT_LEN].set(gold)
    return {'input_ids': ids, 'attention_mask': attn, 'labels': labels}


if __name__ == "__main__":
    key = jax.random.PRNGKey(0)
    pkey, d0, d1 = jax.random.split(key, 3)
    params = init_params(pkey)
    datas = [make_data(d0), make_data(d1)]

    predict_labels, scores, loss = forward(params, datas)

    jax.block_until_ready(loss)
    for s in scores:
        jax.block_until_ready(s)
    for l in predict_labels:
        jax.block_until_ready(l)

    assert scores[0].shape == (SEQ_LEN, CLASS_NUMS)
    assert predict_labels[0].shape == (1,)
    assert bool(jnp.isfinite(loss))
    print("KERNEL_OK")
</pallas_src>

<mosaic_0001>
module attributes {stable_mosaic.version = 11 : i64} {
  func.func @_seq_kernel(%arg0: i32, %arg1: i32, %arg2: memref<1x1x16x32xf32, #tpu.memory_space<vmem>>, %arg3: memref<1x1x16x1xf32, #tpu.memory_space<vmem>>, %arg4: memref<1x1x1x16xf32, #tpu.memory_space<vmem>>, %arg5: memref<1x1x16x1xf32, #tpu.memory_space<vmem>>, %arg6: memref<1x1x16x64xf32, #tpu.memory_space<vmem>>, %arg7: memref<4x32xf32, #tpu.memory_space<vmem>>, %arg8: memref<32x96xf32, #tpu.memory_space<vmem>>, %arg9: memref<1x96xf32, #tpu.memory_space<vmem>>, %arg10: memref<32x32xf32, #tpu.memory_space<vmem>>, %arg11: memref<1x32xf32, #tpu.memory_space<vmem>>, %arg12: memref<32x128xf32, #tpu.memory_space<vmem>>, %arg13: memref<1x128xf32, #tpu.memory_space<vmem>>, %arg14: memref<128x32xf32, #tpu.memory_space<vmem>>, %arg15: memref<1x32xf32, #tpu.memory_space<vmem>>, %arg16: memref<32x64xf32, #tpu.memory_space<vmem>>, %arg17: memref<1x64xf32, #tpu.memory_space<vmem>>, %arg18: memref<1x3x4xf32, #tpu.memory_space<vmem>>, %arg19: memref<1x1x1xf32, #tpu.memory_space<vmem>>, %arg20: memref<1x32xf32, #tpu.memory_space<vmem>>) attributes {dimension_semantics = [#tpu.dimension_semantics<parallel>, #tpu.dimension_semantics<arbitrary>], iteration_bounds = array<i64: 2, 3>, scalar_prefetch = 0 : i64, scratch_operands = 1 : i64, tpu.core_type = #tpu.core_type<tc>, window_params = [{transform_indices = @transform_0, window_bounds = array<i64: 1, 1, 16, 32>}, {transform_indices = @transform_1, window_bounds = array<i64: 1, 1, 16, 1>}, {transform_indices = @transform_2, window_bounds = array<i64: 1, 1, 1, 16>}, {transform_indices = @transform_3, window_bounds = array<i64: 1, 1, 16, 1>}, {transform_indices = @transform_4, window_bounds = array<i64: 1, 1, 16, 64>}, {pipeline_mode = #tpu.pipeline_mode<synchronous>, transform_indices = @transform_5, window_bounds = array<i64: 4, 32>}, {pipeline_mode = #tpu.pipeline_mode<synchronous>, transform_indices = @transform_6, window_bounds = array<i64: 32, 96>}, {pipeline_mode = #tpu.pipeline_mode<synchronous>, transform_indices = @transform_7, window_bounds = array<i64: 1, 96>}, {pipeline_mode = #tpu.pipeline_mode<synchronous>, transform_indices = @transform_8, window_bounds = array<i64: 32, 32>}, {pipeline_mode = #tpu.pipeline_mode<synchronous>, transform_indices = @transform_9, window_bounds = array<i64: 1, 32>}, {pipeline_mode = #tpu.pipeline_mode<synchronous>, transform_indices = @transform_10, window_bounds = array<i64: 32, 128>}, {pipeline_mode = #tpu.pipeline_mode<synchronous>, transform_indices = @transform_11, window_bounds = array<i64: 1, 128>}, {pipeline_mode = #tpu.pipeline_mode<synchronous>, transform_indices = @transform_12, window_bounds = array<i64: 128, 32>}, {pipeline_mode = #tpu.pipeline_mode<synchronous>, transform_indices = @transform_13, window_bounds = array<i64: 1, 32>}, {pipeline_mode = #tpu.pipeline_mode<synchronous>, transform_indices = @transform_14, window_bounds = array<i64: 32, 64>}, {pipeline_mode = #tpu.pipeline_mode<synchronous>, transform_indices = @transform_15, window_bounds = array<i64: 1, 64>}, {transform_indices = @transform_16, window_bounds = array<i64: 1, 3, 4>}, {transform_indices = @transform_17, window_bounds = array<i64: 1, 1, 1>}]} {
    %c0_i32 = arith.constant 0 : i32
    %0 = arith.cmpi eq, %arg1, %c0_i32 : i32
    %1 = arith.extui %0 : i1 to i32
    %c0_i32_0 = arith.constant 0 : i32
    %2 = arith.cmpi ne, %1, %c0_i32_0 : i32
    scf.if %2 {
      %cst_78 = arith.constant 0.000000e+00 : f32
      %132 = vector.broadcast %cst_78 : f32 to vector<1x32xf32>
      %c0_79 = arith.constant 0 : index
      %c0_80 = arith.constant 0 : index
      %133 = vector.load %arg20[%c0_79, %c0_80] : memref<1x32xf32, #tpu.memory_space<vmem>>, vector<1x32xf32>
      tpu.vector_store %arg20[%c0_79, %c0_80], %132 {strides = array<i32>} : memref<1x32xf32, #tpu.memory_space<vmem>>, vector<1x32xf32>,
      %cst_81 = arith.constant 0.000000e+00 : f32
      %134 = vector.broadcast %cst_81 : f32 to vector<1x1xf32>
      %c0_82 = arith.constant 0 : index
      %c0_83 = arith.constant 0 : index
      %c0_84 = arith.constant 0 : index
      %135 = vector.load %arg19[%c0_82, %c0_83, %c0_84] : memref<1x1x1xf32, #tpu.memory_space<vmem>>, vector<1x1x1xf32>
      %136 = vector.shape_cast %135 : vector<1x1x1xf32> to vector<1x1xf32>
      %137 = vector.shape_cast %134 : vector<1x1xf32> to vector<1x1x1xf32>
      tpu.vector_store %arg19[%c0_82, %c0_83, %c0_84], %137 {strides = array<i32>} : memref<1x1x1xf32, #tpu.memory_space<vmem>>, vector<1x1x1xf32>,
      %cst_85 = arith.constant 0.000000e+00 : f32
      %138 = vector.broadcast %cst_85 : f32 to vector<3x4xf32>
      %c0_86 = arith.constant 0 : index
      %c0_87 = arith.constant 0 : index
      %c0_88 = arith.constant 0 : index
      %139 = vector.load %arg18[%c0_86, %c0_87, %c0_88] : memref<1x3x4xf32, #tpu.memory_space<vmem>>, vector<1x3x4xf32>
      %140 = vector.shape_cast %139 : vector<1x3x4xf32> to vector<3x4xf32>
      %141 = vector.shape_cast %138 : vector<3x4xf32> to vector<1x3x4xf32>
      tpu.vector_store %arg18[%c0_86, %c0_87, %c0_88], %141 {strides = array<i32>} : memref<1x3x4xf32, #tpu.memory_space<vmem>>, vector<1x3x4xf32>,
    } else {
    }
    %c0 = arith.constant 0 : index
    %c0_1 = arith.constant 0 : index
    %c0_2 = arith.constant 0 : index
    %c0_3 = arith.constant 0 : index
    %3 = vector.load %arg2[%c0, %c0_1, %c0_2, %c0_3] : memref<1x1x16x32xf32, #tpu.memory_space<vmem>>, vector<1x1x16x32xf32>
    %4 = vector.shape_cast %3 : vector<1x1x16x32xf32> to vector<16x32xf32>
    %c0_4 = arith.constant 0 : index
    %c0_5 = arith.constant 0 : index
    %c0_6 = arith.constant 0 : index
    %c0_7 = arith.constant 0 : index
    %5 = vector.load %arg3[%c0_4, %c0_5, %c0_6, %c0_7] : memref<1x1x16x1xf32, #tpu.memory_space<vmem>>, vector<1x1x16x1xf32>
    %6 = vector.shape_cast %5 : vector<1x1x16x1xf32> to vector<16x1xf32>
    %c0_8 = arith.constant 0 : index
    %c0_9 = arith.constant 0 : index
    %7 = vector.load %arg20[%c0_8, %c0_9] : memref<1x32xf32, #tpu.memory_space<vmem>>, vector<1x32xf32>
    %8 = vector.broadcast %6 : vector<16x1xf32> to vector<16x32xf32>
    %9 = vector.broadcast %7 : vector<1x32xf32> to vector<16x32xf32>
    %10 = arith.mulf %8, %9 : vector<16x32xf32>
    %11 = arith.addf %4, %10 : vector<16x32xf32>
    %c0_10 = arith.constant 0 : index
    %c0_11 = arith.constant 0 : index
    %12 = vector.load %arg8[%c0_10, %c0_11] : memref<32x96xf32, #tpu.memory_space<vmem>>, vector<32x96xf32>
    %cst = arith.constant dense<0.000000e+00> : vector<16x96xf32>
    %13 = tpu.matmul %11, %12, %cst {dimension_numbers = #tpu.dot_dimension_numbers<[1], [0], [0], [1], [0, 0, 1, 1], [], []>} : vector<16x32xf32>, vector<32x96xf32>, vector<16x96xf32> -> vector<16x96xf32>
    %c0_12 = arith.constant 0 : index
    %c0_13 = arith.constant 0 : index
    %14 = vector.load %arg9[%c0_12, %c0_13] : memref<1x96xf32, #tpu.memory_space<vmem>>, vector<1x96xf32>
    %15 = vector.broadcast %14 : vector<1x96xf32> to vector<16x96xf32>
    %16 = arith.addf %13, %15 : vector<16x96xf32>
    %17 = vector.extract_strided_slice %16 {offsets = [0, 0], sizes = [16, 32], strides = [1, 1]} : vector<16x96xf32> to vector<16x32xf32>
    %18 = vector.extract_strided_slice %16 {offsets = [0, 32], sizes = [16, 32], strides = [1, 1]} : vector<16x96xf32> to vector<16x32xf32>
    %19 = vector.extract_strided_slice %16 {offsets = [0, 64], sizes = [16, 32], strides = [1, 1]} : vector<16x96xf32> to vector<16x32xf32>
    %20 = tpu.transpose %18, [1, 0] : vector<16x32xf32> -> vector<32x16xf32>
    %cst_14 = arith.constant dense<0.000000e+00> : vector<16x16xf32>
    %21 = tpu.matmul %17, %20, %cst_14 {dimension_numbers = #tpu.dot_dimension_numbers<[1], [0], [0], [1], [0, 0, 1, 1], [], []>} : vector<16x32xf32>, vector<32x16xf32>, vector<16x16xf32> -> vector<16x16xf32>
    %cst_15 = arith.constant 0.176776692 : f32
    %22 = vector.broadcast %cst_15 : f32 to vector<16x16xf32>
    %23 = arith.mulf %21, %22 : vector<16x16xf32>
    %c0_16 = arith.constant 0 : index
    %c0_17 = arith.constant 0 : index
    %c0_18 = arith.constant 0 : index
    %c0_19 = arith.constant 0 : index
    %24 = vector.load %arg4[%c0_16, %c0_17, %c0_18, %c0_19] : memref<1x1x1x16xf32, #tpu.memory_space<vmem>>, vector<1x1x1x16xf32>
    %25 = vector.shape_cast %24 : vector<1x1x1x16xf32> to vector<1x16xf32>
    %26 = vector.broadcast %25 : vector<1x16xf32> to vector<16x16xf32>
    %27 = arith.addf %23, %26 : vector<16x16xf32>
    %cst_20 = arith.constant dense<0xFF800000> : vector<16xf32>
    %28 = vector.multi_reduction <maximumf>, %27, %cst_20 [1] : vector<16x16xf32> to vector<16xf32>
    %29 = vector.shape_cast %28 : vector<16xf32> to vector<16x1xf32>
    %30 = vector.broadcast %29 : vector<16x1xf32> to vector<16x16xf32>
    %31 = arith.subf %27, %30 : vector<16x16xf32>
    %32 = math.exp %31 : vector<16x16xf32>
    %cst_21 = arith.constant dense<0.000000e+00> : vector<16xf32>
    %33 = vector.multi_reduction <add>, %32, %cst_21 [1] : vector<16x16xf32> to vector<16xf32>
    %34 = vector.shape_cast %33 : vector<16xf32> to vector<16x1xf32>
    %35 = tpu.reciprocal %34 {approx = true} : vector<16x1xf32> -> vector<16x1xf32>
    %36 = vector.broadcast %35 : vector<16x1xf32> to vector<16x16xf32>
    %37 = arith.mulf %32, %36 : vector<16x16xf32>
    %cst_22 = arith.constant dense<0.000000e+00> : vector<16x32xf32>
    %38 = tpu.matmul %37, %19, %cst_22 {dimension_numbers = #tpu.dot_dimension_numbers<[1], [0], [0], [1], [0, 0, 1, 1], [], []>} : vector<16x16xf32>, vector<16x32xf32>, vector<16x32xf32> -> vector<16x32xf32>
    %c0_23 = arith.constant 0 : index
    %c0_24 = arith.constant 0 : index
    %39 = vector.load %arg10[%c0_23, %c0_24] : memref<32x32xf32, #tpu.memory_space<vmem>>, vector<32x32xf32>
    %cst_25 = arith.constant dense<0.000000e+00> : vector<16x32xf32>
    %40 = tpu.matmul %38, %39, %cst_25 {dimension_numbers = #tpu.dot_dimension_numbers<[1], [0], [0], [1], [0, 0, 1, 1], [], []>} : vector<16x32xf32>, vector<32x32xf32>, vector<16x32xf32> -> vector<16x32xf32>
    %41 = arith.addf %11, %40 : vector<16x32xf32>
    %c0_26 = arith.constant 0 : index
    %c0_27 = arith.constant 0 : index
    %42 = vector.load %arg11[%c0_26, %c0_27] : memref<1x32xf32, #tpu.memory_space<vmem>>, vector<1x32xf32>
    %43 = vector.broadcast %42 : vector<1x32xf32> to vector<16x32xf32>
    %44 = arith.addf %41, %43 : vector<16x32xf32>
    %c0_28 = arith.constant 0 : index
    %c0_29 = arith.constant 0 : index
    %45 = vector.load %arg12[%c0_28, %c0_29] : memref<32x128xf32, #tpu.memory_space<vmem>>, vector<32x128xf32>
    %cst_30 = arith.constant dense<0.000000e+00> : vector<16x128xf32>
    %46 = tpu.matmul %44, %45, %cst_30 {dimension_numbers = #tpu.dot_dimension_numbers<[1], [0], [0], [1], [0, 0, 1, 1], [], []>} : vector<16x32xf32>, vector<32x128xf32>, vector<16x128xf32> -> vector<16x128xf32>
    %c0_31 = arith.constant 0 : index
    %c0_32 = arith.constant 0 : index
    %47 = vector.load %arg13[%c0_31, %c0_32] : memref<1x128xf32, #tpu.memory_space<vmem>>, vector<1x128xf32>
    %48 = vector.broadcast %47 : vector<1x128xf32> to vector<16x128xf32>
    %49 = arith.addf %46, %48 : vector<16x128xf32>
    %cst_33 = arith.constant 0.000000e+00 : f32
    %50 = vector.broadcast %cst_33 : f32 to vector<16x128xf32>
    %51 = arith.maximumf %49, %50 : vector<16x128xf32>
    %c0_34 = arith.constant 0 : index
    %c0_35 = arith.constant 0 : index
    %52 = vector.load %arg14[%c0_34, %c0_35] : memref<128x32xf32, #tpu.memory_space<vmem>>, vector<128x32xf32>
    %cst_36 = arith.constant dense<0.000000e+00> : vector<16x32xf32>
    %53 = tpu.matmul %51, %52, %cst_36 {dimension_numbers = #tpu.dot_dimension_numbers<[1], [0], [0], [1], [0, 0, 1, 1], [], []>} : vector<16x128xf32>, vector<128x32xf32>, vector<16x32xf32> -> vector<16x32xf32>
    %54 = arith.addf %44, %53 : vector<16x32xf32>
    %c0_37 = arith.constant 0 : index
    %c0_38 = arith.constant 0 : index
    %55 = vector.load %arg15[%c0_37, %c0_38] : memref<1x32xf32, #tpu.memory_space<vmem>>, vector<1x32xf32>
    %56 = vector.broadcast %55 : vector<1x32xf32> to vector<16x32xf32>
    %57 = arith.addf %54, %56 : vector<16x32xf32>
    %c0_39 = arith.constant 0 : index
    %c0_40 = arith.constant 0 : index
    %58 = vector.load %arg16[%c0_39, %c0_40] : memref<32x64xf32, #tpu.memory_space<vmem>>, vector<32x64xf32>
    %cst_41 = arith.constant dense<0.000000e+00> : vector<16x64xf32>
    %59 = tpu.matmul %57, %58, %cst_41 {dimension_numbers = #tpu.dot_dimension_numbers<[1], [0], [0], [1], [0, 0, 1, 1], [], []>} : vector<16x32xf32>, vector<32x64xf32>, vector<16x64xf32> -> vector<16x64xf32>
    %c0_42 = arith.constant 0 : index
    %c0_43 = arith.constant 0 : index
    %60 = vector.load %arg17[%c0_42, %c0_43] : memref<1x64xf32, #tpu.memory_space<vmem>>, vector<1x64xf32>
    %61 = vector.broadcast %60 : vector<1x64xf32> to vector<16x64xf32>
    %62 = arith.addf %59, %61 : vector<16x64xf32>
    %cst_44 = arith.constant dense<0xFF800000> : vector<16xf32>
    %63 = vector.multi_reduction <maximumf>, %62, %cst_44 [1] : vector<16x64xf32> to vector<16xf32>
    %64 = vector.shape_cast %63 : vector<16xf32> to vector<16x1xf32>
    %65 = vector.broadcast %64 : vector<16x1xf32> to vector<16x64xf32>
    %66 = arith.subf %62, %65 : vector<16x64xf32>
    %67 = math.exp %66 : vector<16x64xf32>
    %cst_45 = arith.constant dense<0.000000e+00> : vector<16xf32>
    %68 = vector.multi_reduction <add>, %67, %cst_45 [1] : vector<16x64xf32> to vector<16xf32>
    %69 = vector.shape_cast %68 : vector<16xf32> to vector<16x1xf32>
    %70 = math.log %69 : vector<16x1xf32>
    %71 = arith.addf %64, %70 : vector<16x1xf32>
    %72 = vector.broadcast %71 : vector<16x1xf32> to vector<16x64xf32>
    %73 = arith.subf %72, %62 : vector<16x64xf32>
    %c0_46 = arith.constant 0 : index
    %c0_47 = arith.constant 0 : index
    %c0_48 = arith.constant 0 : index
    %c0_49 = arith.constant 0 : index
    %74 = vector.load %arg6[%c0_46, %c0_47, %c0_48, %c0_49] : memref<1x1x16x64xf32, #tpu.memory_space<vmem>>, vector<1x1x16x64xf32>
    %75 = vector.shape_cast %74 : vector<1x1x16x64xf32> to vector<16x64xf32>
    %76 = arith.mulf %73, %75 : vector<16x64xf32>
    %cst_50 = arith.constant dense<0.000000e+00> : vector<16xf32>
    %77 = vector.multi_reduction <add>, %76, %cst_50 [1] : vector<16x64xf32> to vector<16xf32>
    %78 = vector.shape_cast %77 : vector<16xf32> to vector<16x1xf32>
    %c0_51 = arith.constant 0 : index
    %c0_52 = arith.constant 0 : index
    %c0_53 = arith.constant 0 : index
    %79 = vector.load %arg19[%c0_51, %c0_52, %c0_53] : memref<1x1x1xf32, #tpu.memory_space<vmem>>, vector<1x1x1xf32>
    %80 = vector.shape_cast %79 : vector<1x1x1xf32> to vector<1x1xf32>
    %cst_54 = arith.constant dense<0.000000e+00> : vector<1xf32>
    %81 = vector.multi_reduction <add>, %78, %cst_54 [0] : vector<16x1xf32> to vector<1xf32>
    %82 = vector.shape_cast %81 : vector<1xf32> to vector<1x1xf32>
    %83 = arith.addf %80, %82 : vector<1x1xf32>
    %c0_55 = arith.constant 0 : index
    %c0_56 = arith.constant 0 : index
    %c0_57 = arith.constant 0 : index
    %84 = vector.load %arg19[%c0_55, %c0_56, %c0_57] : memref<1x1x1xf32, #tpu.memory_space<vmem>>, vector<1x1x1xf32>
    %85 = vector.shape_cast %84 : vector<1x1x1xf32> to vector<1x1xf32>
    %86 = vector.shape_cast %83 : vector<1x1xf32> to vector<1x1x1xf32>
    tpu.vector_store %arg19[%c0_55, %c0_56, %c0_57], %86 {strides = array<i32>} : memref<1x1x1xf32, #tpu.memory_space<vmem>>, vector<1x1x1xf32>,
    %c0_58 = arith.constant 0 : index
    %c0_59 = arith.constant 0 : index
    %c0_60 = arith.constant 0 : index
    %c0_61 = arith.constant 0 : index
    %87 = vector.load %arg5[%c0_58, %c0_59, %c0_60, %c0_61] : memref<1x1x16x1xf32, #tpu.memory_space<vmem>>, vector<1x1x16x1xf32>
    %88 = vector.shape_cast %87 : vector<1x1x16x1xf32> to vector<16x1xf32>
    %89 = vector.broadcast %88 : vector<16x1xf32> to vector<16x64xf32>
    %90 = arith.mulf %89, %62 : vector<16x64xf32>
    %cst_62 = arith.constant dense<0.000000e+00> : vector<64xf32>
    %91 = vector.multi_reduction <add>, %90, %cst_62 [0] : vector<16x64xf32> to vector<64xf32>
    %92 = vector.shape_cast %91 : vector<64xf32> to vector<1x64xf32>
    %93 = vector.extract_strided_slice %92 {offsets = [0, 1], sizes = [1, 4], strides = [1, 1]} : vector<1x64xf32> to vector<1x4xf32>
    %94 = tpu.iota {dimensions = array<i32: 0>} : vector<3x1xi32>
    %95 = vector.broadcast %arg1 : i32 to vector<3x1xi32>
    %96 = arith.cmpi eq, %94, %95 : vector<3x1xi32>
    %c0_63 = arith.constant 0 : index
    %c0_64 = arith.constant 0 : index
    %c0_65 = arith.constant 0 : index
    %97 = vector.load %arg18[%c0_63, %c0_64, %c0_65] : memref<1x3x4xf32, #tpu.memory_space<vmem>>, vector<1x3x4xf32>
    %98 = vector.shape_cast %97 : vector<1x3x4xf32> to vector<3x4xf32>
    %99 = vector.shape_cast %96 : vector<3x1xi1> to vector<3x1xi1>
    %100 = vector.broadcast %99 : vector<3x1xi1> to vector<3x4xi1>
    %101 = vector.shape_cast %93 : vector<1x4xf32> to vector<1x4xf32>
    %102 = vector.broadcast %101 : vector<1x4xf32> to vector<3x4xf32>
    %103 = arith.select %100, %102, %98 : vector<3x4xi1>, vector<3x4xf32>
    %c0_66 = arith.constant 0 : index
    %c0_67 = arith.constant 0 : index
    %c0_68 = arith.constant 0 : index
    %104 = vector.load %arg18[%c0_66, %c0_67, %c0_68] : memref<1x3x4xf32, #tpu.memory_space<vmem>>, vector<1x3x4xf32>
    %105 = vector.shape_cast %104 : vector<1x3x4xf32> to vector<3x4xf32>
    %106 = vector.shape_cast %103 : vector<3x4xf32> to vector<1x3x4xf32>
    tpu.vector_store %arg18[%c0_66, %c0_67, %c0_68], %106 {strides = array<i32>} : memref<1x3x4xf32, #tpu.memory_space<vmem>>, vector<1x3x4xf32>,
    %107 = tpu.iota {dimensions = array<i32: 1>} : vector<1x4xi32>
    %108 = arith.sitofp %107 : vector<1x4xi32> to vector<1x4xf32>
    %cst_69 = arith.constant dense<0xFF800000> : vector<1xf32>
    %109 = vector.multi_reduction <maximumf>, %93, %cst_69 [1] : vector<1x4xf32> to vector<1xf32>
    %110 = vector.shape_cast %109 : vector<1xf32> to vector<1x1xf32>
    %111 = vector.broadcast %110 : vector<1x1xf32> to vector<1x4xf32>
    %112 = arith.cmpf oge, %93, %111 : vector<1x4xf32>
    %cst_70 = arith.constant 4.000000e+00 : f32
    %113 = vector.broadcast %cst_70 : f32 to vector<1x4xf32>
    %114 = arith.select %112, %108, %113 : vector<1x4xi1>, vector<1x4xf32>
    %cst_71 = arith.constant dense<0x7F800000> : vector<1xf32>
    %115 = vector.multi_reduction <minimumf>, %114, %cst_71 [1] : vector<1x4xf32> to vector<1xf32>
    %116 = vector.shape_cast %115 : vector<1xf32> to vector<1x1xf32>
    %117 = tpu.iota {dimensions = array<i32: 0>} : vector<4x1xi32>
    %118 = arith.sitofp %117 : vector<4x1xi32> to vector<4x1xf32>
    %119 = vector.broadcast %116 : vector<1x1xf32> to vector<4x1xf32>
    %120 = arith.subf %118, %119 : vector<4x1xf32>
    %121 = math.absf %120 : vector<4x1xf32>
    %cst_72 = arith.constant 5.000000e-01 : f32
    %122 = vector.broadcast %cst_72 : f32 to vector<4x1xf32>
    %123 = arith.cmpf olt, %121, %122 : vector<4x1xf32>
    %124 = arith.extui %123 : vector<4x1xi1> to vector<4x1xi32>
    %125 = arith.sitofp %124 : vector<4x1xi32> to vector<4x1xf32>
    %c0_73 = arith.constant 0 : index
    %c0_74 = arith.constant 0 : index
    %126 = vector.load %arg7[%c0_73, %c0_74] : memref<4x32xf32, #tpu.memory_space<vmem>>, vector<4x32xf32>
    %127 = vector.broadcast %125 : vector<4x1xf32> to vector<4x32xf32>
    %128 = arith.mulf %127, %126 : vector<4x32xf32>
    %cst_75 = arith.constant dense<0.000000e+00> : vector<32xf32>
    %129 = vector.multi_reduction <add>, %128, %cst_75 [0] : vector<4x32xf32> to vector<32xf32>
    %130 = vector.shape_cast %129 : vector<32xf32> to vector<1x32xf32>
    %c0_76 = arith.constant 0 : index
    %c0_77 = arith.constant 0 : index
    %131 = vector.load %arg20[%c0_76, %c0_77] : memref<1x32xf32, #tpu.memory_space<vmem>>, vector<1x32xf32>
    tpu.vector_store %arg20[%c0_76, %c0_77], %130 {strides = array<i32>} : memref<1x32xf32, #tpu.memory_space<vmem>>, vector<1x32xf32>,
    return
  }
  func.func @transform_0(%arg0: i32, %arg1: i32) -> (i32, i32, i32, i32) {
    %c0_i32 = arith.constant 0 : i32
    %c0_i32_0 = arith.constant 0 : i32
    %c0_i32_1 = arith.constant 0 : i32
    return %arg0, %arg1, %c0_i32, %c0_i32_0 : i32, i32, i32, i32
  }
  func.func @transform_1(%arg0: i32, %arg1: i32) -> (i32, i32, i32, i32) {
    %c0_i32 = arith.constant 0 : i32
    %c0_i32_0 = arith.constant 0 : i32
    %c0_i32_1 = arith.constant 0 : i32
    return %arg0, %arg1, %c0_i32, %c0_i32_0 : i32, i32, i32, i32
  }
  func.func @transform_2(%arg0: i32, %arg1: i32) -> (i32, i32, i32, i32) {
    %c0_i32 = arith.constant 0 : i32
    %c0_i32_0 = arith.constant 0 : i32
    %c0_i32_1 = arith.constant 0 : i32
    return %arg0, %arg1, %c0_i32, %c0_i32_0 : i32, i32, i32, i32
  }
  func.func @transform_3(%arg0: i32, %arg1: i32) -> (i32, i32, i32, i32) {
    %c0_i32 = arith.constant 0 : i32
    %c0_i32_0 = arith.constant 0 : i32
    %c0_i32_1 = arith.constant 0 : i32
    return %arg0, %arg1, %c0_i32, %c0_i32_0 : i32, i32, i32, i32
  }
  func.func @transform_4(%arg0: i32, %arg1: i32) -> (i32, i32, i32, i32) {
    %c0_i32 = arith.constant 0 : i32
    %c0_i32_0 = arith.constant 0 : i32
    %c0_i32_1 = arith.constant 0 : i32
    return %arg0, %arg1, %c0_i32, %c0_i32_0 : i32, i32, i32, i32
  }
  func.func @transform_5(%arg0: i32, %arg1: i32) -> (i32, i32) {
    %c0_i32 = arith.constant 0 : i32
    %c0_i32_0 = arith.constant 0 : i32
    %c0_i32_1 = arith.constant 0 : i32
    return %c0_i32, %c0_i32_0 : i32, i32
  }
  func.func @transform_6(%arg0: i32, %arg1: i32) -> (i32, i32) {
    %c0_i32 = arith.constant 0 : i32
    %c0_i32_0 = arith.constant 0 : i32
    %c0_i32_1 = arith.constant 0 : i32
    return %c0_i32, %c0_i32_0 : i32, i32
  }
  func.func @transform_7(%arg0: i32, %arg1: i32) -> (i32, i32) {
    %c0_i32 = arith.constant 0 : i32
    %c0_i32_0 = arith.constant 0 : i32
    %c0_i32_1 = arith.constant 0 : i32
    return %c0_i32, %c0_i32_0 : i32, i32
  }
  func.func @transform_8(%arg0: i32, %arg1: i32) -> (i32, i32) {
    %c0_i32 = arith.constant 0 : i32
    %c0_i32_0 = arith.constant 0 : i32
    %c0_i32_1 = arith.constant 0 : i32
    return %c0_i32, %c0_i32_0 : i32, i32
  }
  func.func @transform_9(%arg0: i32, %arg1: i32) -> (i32, i32) {
    %c0_i32 = arith.constant 0 : i32
    %c0_i32_0 = arith.constant 0 : i32
    %c0_i32_1 = arith.constant 0 : i32
    return %c0_i32, %c0_i32_0 : i32, i32
  }
  func.func @transform_10(%arg0: i32, %arg1: i32) -> (i32, i32) {
    %c0_i32 = arith.constant 0 : i32
    %c0_i32_0 = arith.constant 0 : i32
    %c0_i32_1 = arith.constant 0 : i32
    return %c0_i32, %c0_i32_0 : i32, i32
  }
  func.func @transform_11(%arg0: i32, %arg1: i32) -> (i32, i32) {
    %c0_i32 = arith.constant 0 : i32
    %c0_i32_0 = arith.constant 0 : i32
    %c0_i32_1 = arith.constant 0 : i32
    return %c0_i32, %c0_i32_0 : i32, i32
  }
  func.func @transform_12(%arg0: i32, %arg1: i32) -> (i32, i32) {
    %c0_i32 = arith.constant 0 : i32
    %c0_i32_0 = arith.constant 0 : i32
    %c0_i32_1 = arith.constant 0 : i32
    return %c0_i32, %c0_i32_0 : i32, i32
  }
  func.func @transform_13(%arg0: i32, %arg1: i32) -> (i32, i32) {
    %c0_i32 = arith.constant 0 : i32
    %c0_i32_0 = arith.constant 0 : i32
    %c0_i32_1 = arith.constant 0 : i32
    return %c0_i32, %c0_i32_0 : i32, i32
  }
  func.func @transform_14(%arg0: i32, %arg1: i32) -> (i32, i32) {
    %c0_i32 = arith.constant 0 : i32
    %c0_i32_0 = arith.constant 0 : i32
    %c0_i32_1 = arith.constant 0 : i32
    return %c0_i32, %c0_i32_0 : i32, i32
  }
  func.func @transform_15(%arg0: i32, %arg1: i32) -> (i32, i32) {
    %c0_i32 = arith.constant 0 : i32
    %c0_i32_0 = arith.constant 0 : i32
    %c0_i32_1 = arith.constant 0 : i32
    return %c0_i32, %c0_i32_0 : i32, i32
  }
  func.func @transform_16(%arg0: i32, %arg1: i32) -> (i32, i32, i32) {
    %c0_i32 = arith.constant 0 : i32
    %c0_i32_0 = arith.constant 0 : i32
    %c0_i32_1 = arith.constant 0 : i32
    return %arg0, %c0_i32, %c0_i32_0 : i32, i32, i32
  }
  func.func @transform_17(%arg0: i32, %arg1: i32) -> (i32, i32, i32) {
    %c0_i32 = arith.constant 0 : i32
    %c0_i32_0 = arith.constant 0 : i32
    %c0_i32_1 = arith.constant 0 : i32
    return %arg0, %c0_i32, %c0_i32_0 : i32, i32, i32
  }
}

</mosaic_0001>

<bundles_post_ra>
// kernel: _forward_batched.1
= control target key start
LH: loop header
LB: loop body
LE: loop exit
PB: predicated region body
PF: predicated region fallthrough
CT: control target
= control target key end

     0   :  { %s2208_s24 = smov 0   ;;  %s2210_s25 = smov 0   ;;  %s2470_s0 = inlined_call_operand.vmem [shape: f32[2,3,16,32], index: 0, kind: input, shape index: {}]   ;;  %s2471_s1 = inlined_call_operand.vmem [shape: f32[2,3,16,1], index: 1, kind: input, shape index: {}]   ;;  %s2472_s2 = inlined_call_operand.vmem [shape: f32[2,3,1,16], index: 2, kind: input, shape index: {}]   ;;  %s2473_s3 = inlined_call_operand.vmem [shape: f32[2,3,16,1], index: 3, kind: input, shape index: {}]   ;;  %s2474_s4 = inlined_call_operand.vmem [shape: f32[2,3,16,64], index: 4, kind: input, shape index: {}]   ;;  %s2475_s5 = inlined_call_operand.vmem [shape: f32[4,32], index: 5, kind: input, shape index: {}]   ;;  %s2476_s6 = inlined_call_operand.vmem [shape: f32[32,96], index: 6, kind: input, shape index: {}]   ;;  %s2477_s7 = inlined_call_operand.vmem [shape: f32[1,96], index: 7, kind: input, shape index: {}]   ;;  %s2478_s8 = inlined_call_operand.vmem [shape: f32[32,32], index: 8, kind: input, shape index: {}]   ;;  %s2479_s9 = inlined_call_operand.vmem [shape: f32[1,32], index: 9, kind: input, shape index: {}]   ;;  %s2480_s10 = inlined_call_operand.vmem [shape: f32[32,128], index: 10, kind: input, shape index: {}]   ;;  %s2481_s11 = inlined_call_operand.vmem [shape: f32[1,128], index: 11, kind: input, shape index: {}]   ;;  %s2482_s12 = inlined_call_operand.vmem [shape: f32[128,32], index: 12, kind: input, shape index: {}]   ;;  %s2483_s13 = inlined_call_operand.vmem [shape: f32[1,32], index: 13, kind: input, shape index: {}]   ;;  %s2484_s14 = inlined_call_operand.vmem [shape: f32[32,64], index: 14, kind: input, shape index: {}]   ;;  %s2485_s15 = inlined_call_operand.vmem [shape: f32[1,64], index: 15, kind: input, shape index: {}]   ;;  %s2486_s16 = inlined_call_operand.vmem [shape: f32[2,3,4], index: 16, kind: output, shape index: {0}]   ;;  %s2487_s17 = inlined_call_operand.vmem [shape: f32[2,1,1], index: 17, kind: output, shape index: {1}]  }
   0x1   :  { %2493 = sst [smem:[#allocation8_spill]] %s2470_s0  ;;  %s2212_s26 = smov 0  }
   0x2   :  { %2494 = sst [smem:[#allocation9_spill]] %s2471_s1  ;;  %s2214_s27 = smov 0  }
   0x3   :  { %2495 = sst [smem:[#allocation10_spill]] %s2475_s5  ;;  %s2216_s28 = smov 0  }
   0x4   :  { %2496 = sst [smem:[#allocation11_spill]] %s2479_s9 }
   0x5   :  { %2497 = sst [smem:[#allocation12_spill]] %s2481_s11 }
   0x6   :  { %2498 = sst [smem:[#allocation13_spill]] %s2482_s12 }
   0x7   :  { %2499 = sst [smem:[#allocation14_spill]] %s2483_s13 }
   0x8   :  { %2500 = sst [smem:[#allocation15_spill]] %s2484_s14 }
   0x9   :  { %2501 = sst [smem:[#allocation16_spill]] %s2485_s15 }
   0xa LB: > { %2502 = sst [smem:[#allocation3_spill]] %s2101_s26  ;;  %s37_s29 = sadd.s32 1, %s2101_s26  ;;  %s2109_s28 = sphi %s2216_s28, %s28_s28   ;;  %s2105_s27 = sphi %s2214_s27, %s2520_s27   ;;  %s2101_s26 = sphi %s2212_s26, %s2519_s26   ;;  %s2097_s25 = sphi %s2210_s25, %s2518_s25   ;;  %s2093_s24 = sphi %s2208_s24, %s2517_s24  }
   0xb   : > { %2503 = sst [smem:[#allocation4_spill]] %s2105_s27  ;;  %s40_s0 = sadd.s32 1, %s2105_s27 }
   0xc   : > { %2504 = sst [smem:[#allocation5_spill]] %s2109_s28  ;;  %p38_p0 = scmp.ge.s32.totalorder %s37_s29, 3 }
   0xd   : > { %p1742_p1 = scmp.ge.s32.totalorder %s2109_s28, 1  ;;  %p570_p2 = scmp.lt.s32.totalorder %s2109_s28, 7 }
   0xe   : > { %s2522_s29 = smov (%p38_p0, %s37_s29), 0  ;;  %s2524_s0 = smov (!%p38_p0, %s40_s0), %s2105_s27 }
   0xf   : > { %2505 = sst [smem:[#allocation6_spill]] %s2522_s29  ;;  %p571_p3 = pnand %p1742_p1, %p570_p2 }
  0x10   : > { %p42_p4 = scmp.ge.s32.totalorder %s2524_s0, 2  ;;  %p662_p5 = scmp.lt.s32.totalorder (!%p571_p3), %s2097_s25, 1 }
  0x11   : > { %574 = sbr.rel (%p571_p3) target bundleno = 2634 (0xa4a), region = 84  ;;  %p664_p6 = scmp.lt.s32.totalorder (!%p571_p3), %s2093_s24, 2 }
  0x12   : > { %s2526_s0 = smov (%p42_p4, %s2524_s0), 0  ;;  %s2507_s5 = sld [smem:[#allocation8_spill]] (!%p571_p3) }
  0x13   : > { %2506 = sst [smem:[#allocation7_spill]] %s2526_s0  ;;  %s2508_s14 = sld [smem:[#allocation9_spill]] (!%p571_p3) }
  0x14   : > { %p1752_p7 = scmp.ne.s32.totalorder (!%p571_p3), %s2093_s24, 0 }
  0x18   : > { %s2528_s25 = smov (!%p662_p5, %s2097_s25), 1  ;;  %vm716_vm0 = vcmask (!%p1752_p7), 253952   ;;  %vm718_vm1 = vcmask (!%p1752_p7), 0   ;;  %vm720_vm2 = vcmask (!%p1752_p7), 26624   ;;  %v2111_v0 = vmov (!%p1752_p7), 0.0  }
  0x19   : > { %s665_s30 = scalar_select %p664_p6, %s2093_s24, 2 }
  0x1a   : > { %s1994_s18 = smul.u32 6, %s2528_s25  ;;  %s1751_s19 = sshll.u32 %s2528_s25, 2  ;;  %717 = vst.msk [vmem:[#allocation2] sm:$0x1] (!%p1752_p7), %vm716_vm0, %v2111_v0 }
  0x1b   : > { %s1743_s1 = sshll.u32 %s665_s30, 1  ;;  %s1995_s20 = smul.u32 3, %s2528_s25 }
  0x1c   : > { %s668_s21 = sadd.s32 %s1994_s18, %s1743_s1  ;;  %s2245_s29 = scalar_lea.vmem %s2486_s16, %s1751_s19 }
  0x1d   : > { %s1744_s27 = sshll.u32 %s668_s21, 3  ;;  %s2247_s26 = sadd.s32 %s1995_s20, %s665_s30  ;;  %721 = vst.msk [vmem:[%s2245_s29] sm:$0x7] (!%p1752_p7), %vm720_vm2, %v2111_v0 }
  0x1e   : > { %s2252_s15 = scalar_lea.vmem %s2507_s5, %s1744_s27  ;;  %s679_s9 = scalar_lea.vmem %s2508_s14, %s1744_s27 }
  0x1f   : > { %s686_s1 = scalar_lea.vmem %s2472_s2, %s2247_s26  ;;  %s2264_s21 = scalar_lea.vmem %s2473_s3, %s1744_s27 }
  0x20   : > { %s2269_s28 = scalar_lea.vmem %s2474_s4, %s1744_s27  ;;  %s2274_s23 = scalar_lea.vmem %s2487_s17, %s2528_s25 }
  0x21   : > { %715 = sbr.rel (%p1752_p7) target bundleno = 40 (0x28), region = 88  ;;  %719 = vst.msk [vmem:[%s2274_s23] sm:$0x1] (!%p1752_p7), %vm718_vm1, %v2111_v0 }
  0x28 PF: > { %v724_v1 = vld [vmem:[%s679_s9] sm:$0xff]  ;;  %v2112_v2 = vmov 0   ;;  %v748_v4 = vld [vmem:[%s2476_s6 + $0x8] sm:$0xff]  ;;  %v749_v7 = vld [vmem:[%s2476_s6 + $0x10] sm:$0xff]  ;;  %vm758_vm3 = vcmask 261120   ;;  %vm940_vm5 = vcmask 130048  }
  0x29   : > { %2043 = vset.pattern.permute.xlu0 %v2112_v2  ;;  %v747_v3 = vld [vmem:[%s2476_s6] sm:$0xff]  ;;  %2054 = vset.pattern.permute.xlu1 %v2112_v2  ;;  %v725_v6 = vld [vmem:[%s679_s9 + $0x8] sm:$0xff]  ;;  %v750_v8 = vld [vmem:[%s2476_s6 + $0x18] sm:$0xff]  ;;  %s2114_s26 = smov 64   ;;  %s2509_s5 = sld [smem:[#allocation13_spill]]  ;;  %vm1434_vm6 = vcmask 523264  }
  0x2a   : > { %729 = vperm.xlu0 %2043, %v724_v1   ;;  %v1920_v5 = vpack.c.bf16 %v748_v4, %v747_v3  ;;  %v1924_v9 = vpack.c.bf16 %v750_v8, %v749_v7  ;;  %v1753_v10 = vld [vmem:[#allocation2] ss:$0 sm:$0xff]  ;;  %v723_v16 = vld [vmem:[%s2252_s15 + $0x8] sm:$0xff]  ;;  %vm1929_vm4 = vmpackc.low %vm758_vm3, %vm758_vm3  ;;  %s2510_s30 = sld [smem:[#allocation11_spill]]  ;;  %s2511_s13 = sld [smem:[#allocation15_spill]]  ;;  %vm1526_vm7 = vcmask 39944  }
  0x2b   : > { %v722_v12 = vld [vmem:[%s2252_s15] sm:$0xff]  ;;  %s2113_s15 = smov 96   ;;  %v1483_v48 = vld [vmem:[%s2264_s21 + $0x8] sm:$0xff]  ;;  %v1052_v51 = vld [vmem:[%s2478_s8 + $0x10] sm:$0xff]  ;;  %s2512_s22 = sld [smem:[#allocation12_spill]]  ;;  %vm1536_vm8 = vcmask 32776  }
  0x2c   : > { %1921 = vmatprep.subr.bf16.mxu0 %v1920_v5  ;;  %v1754_v19 = vld [vmem:[%s2477_s7] ss:$0 sm:$0xff]  ;;  %v1051_v50 = vld [vmem:[%s2478_s8 + $0x8] sm:$0xff]  ;;  %v1053_v53 = vld [vmem:[%s2478_s8 + $0x18] sm:$0xff]  ;;  %s2514_s12 = sld [smem:[#allocation16_spill]]  ;;  %s2116_s14 = smov 127  }
  0x2d   : > { %1923 = vmatpush3.bf16.msra.mxu0 %v1920_v5  ;;  %v1761_v30 = vld [vmem:[%s686_s1] ss:$0 sm:$0xff]  ;;  %v1942_v54 = vpack.c.bf16 %v1053_v53, %v1052_v51  ;;  %v1147_v2 = vld [vmem:[%s2480_s10 + $0x8] sm:$0xff]  ;;  %v1149_v7 = vld [vmem:[%s2480_s10 + $0x18] sm:$0xff]  ;;  %s2513_s1 = sld [smem:[#allocation14_spill]]  ;;  %vm1521_vm11 = vcmask 26624  }
  0x2e   : > { %734 = vperm.xlu0 %2043, %v725_v6   ;;  %1925 = vmatprep.subr.bf16.mxu0 %v1924_v9  ;;  %v1050_v49 = vld [vmem:[%s2478_s8] sm:$0xff]  ;;  %v1148_v6 = vld [vmem:[%s2480_s10 + $0x10] sm:$0xff]  ;;  %s2515_s25 = sld [smem:[#allocation10_spill]]  ;;  %vm1552_vm13 = vcmask 257024   ;;  %vm1560_vm14 = vcmask 253952   ;;  %vm1480_vm15 = vcmask 0  }
  0x2f   : > { %v1938_v52 = vpack.c.bf16 %v1051_v50, %v1050_v49  ;;  %v1146_v1 = vld [vmem:[%s2480_s10] sm:$0xff]  ;;  %v1950_v8 = vpack.c.bf16 %v1149_v7, %v1148_v6 }
  0x30   : > { %v1946_v3 = vpack.c.bf16 %v1147_v2, %v1146_v1  ;;  %v1344_v50 = vld [vmem:[%s2511_s13 + $0x10] sm:$0xff]  ;;  %v1345_v51 = vld [vmem:[%s2511_s13 + $0x18] sm:$0xff] }
  0x31   : > { %1927 = vmatpush3.bf16.msra.mxu0 %v1924_v9  ;;  %1939 = vmatprep.subr.bf16.mxu1 %v1938_v52  ;;  %v1240_v9 = vld [vmem:[%s2509_s5] sm:$0xff] }
  0x32   : > { %1941 = vmatpush3.bf16.msra.mxu1 %v1938_v52  ;;  %v1990_v52 = vpack.c.bf16 %v1345_v51, %v1344_v50 }
  0x33   : > { %1943 = vmatprep.subr.bf16.mxu1 %v1942_v54 }
  0x36   : > { %1945 = vmatpush3.bf16.msra.mxu1 %v1942_v54 }
  0xa9   : > { %v730_v11 = vpop.permute.xlu0 %729 }
  0xaa   : > { %v743_v13 = vmul.f32 %v1753_v10, %v730_v11  ;;  %v1242_v11 = vld [vmem:[%s2509_s5 + $0x10] sm:$0xff] }
  0xac   : > { %v2292_v14 = vadd.f32 %v743_v13, %v722_v12  ;;  %v1243_v13 = vld [vmem:[%s2509_s5 + $0x18] sm:$0xff] }
  0xad   : > { %v735_v15 = vpop.permute.xlu0 %734 }
  0xae   : > { %v744_v17 = vmul.f32 %v1753_v10, %v735_v15  ;;  %1835 = vmatprep.mubr.msk.f32.mxu0 %vm758_vm3, %v2292_v14  ;;  %v1241_v10 = vld [vmem:[%s2509_s5 + $0x8] sm:$0xff]  ;;  %v1958_v15 = vpack.c.bf16 %v1243_v13, %v1242_v11 }
  0xaf   : > { %v1954_v12 = vpack.c.bf16 %v1241_v10, %v1240_v9 }
  0xb0   : > { %v2297_v18 = vadd.f32 %v744_v17, %v723_v16  ;;  %v1244_v16 = vld [vmem:[%s2509_s5 + $0x20] sm:$0xff]  ;;  %v1245_v17 = vld [vmem:[%s2509_s5 + $0x28] sm:$0xff] }
  0xb1   : > { %1955 = vmatprep.subr.bf16.mxu1 %v1954_v12 }
  0xb2   : > { %1836 = vmatmul.mubr.msk.f32.vlgmr.msra.gmra.mrb[0].mxu0 %vm758_vm3, %v2297_v18 }
 0x185   : > { %v1837_v20 = vpop.f32.mrb[0].mxu0 }
 0x186   : > { %v837_v21 = vadd.f32 %v1837_v20, %v1754_v19  ;;  %v831_v22 = vpop.f32.mrb[1].mxu0  ;;  %v1246_v20 = vld [vmem:[%s2509_s5 + $0x30] sm:$0xff] }
 0x187   : > { %v832_v23 = vadd.f32 %v1754_v19, %v831_v22  ;;  %v1962_v19 = vpack.c.bf16 %v1245_v17, %v1244_v16 }
 0x189   : > { %1842 = vmatprep.mubr.msk.f32.mxu0 %vm758_vm3, %v832_v23  ;;  %v2044_v24 = vpack.i.bf16 %v837_v21, %v832_v23  ;;  %v1248_v23 = vld [vmem:[%s2509_s5 + $0x40] sm:$0xff] }
 0x18b   : > { %2045 = vrot.lane.b32.xlu1 %v2044_v24, %s2113_s15 }
 0x1fd   : > { %v2046_v25 = vpop.permute.xlu1 %2045 }
 0x1fe   : > { %v2048_v26 = vunpack.i.h.bf16 %v2046_v25  ;;  %v2047_v27 = vunpack.i.l.bf16 %v2046_v25 }
 0x200   : > { %v1928_v28 = vpack.c.bf16 %v2048_v26, %v2047_v27  ;;  %v1250_v26 = vld [vmem:[%s2509_s5 + $0x50] sm:$0xff]  ;;  %v1251_v27 = vld [vmem:[%s2509_s5 + $0x58] sm:$0xff] }
 0x202   : > { %1930 = vmatprep.subr.msk.bf16.mxu0 %vm1929_vm4, %v1928_v28 }
 0x203   : > { %1933 = vmatpush3.bf16.xpose.msk.msra.mxu0 %vm1929_vm4, %v1928_v28  ;;  %v1974_v28 = vpack.c.bf16 %v1251_v27, %v1250_v26 }
 0x20a   : > { %1843 = vmatmul.mubr.msk.f32.vlgmr.msra.gmra.mrb[2].mxu0 %vm758_vm3, %v837_v21  ;;  %v1247_v21 = vld [vmem:[%s2509_s5 + $0x38] sm:$0xff] }
 0x20b   : > { %v1966_v22 = vpack.c.bf16 %v1247_v21, %v1246_v20 }
 0x2dd   : > { %v1844_v29 = vpop.f32.mrb[2].mxu0 }
 0x2de   : > { %v930_v31 = vmul.f32 0.17677669, %v1844_v29  ;;  %v920_v32 = vpop.f32.mrb[3].mxu0  ;;  %v1252_v29 = vld [vmem:[%s2509_s5 + $0x60] sm:$0xff] }
 0x2df   : > { %v929_v33 = vmul.f32 0.17677669, %v920_v32 }
 0x2e0   : > { %v939_v34 = vadd.f32 %v1761_v30, %v930_v31 }
 0x2e1   : > { %v938_v35 = vadd.f32 %v1761_v30, %v929_v33  ;;  %v1253_v30 = vld [vmem:[%s2509_s5 + $0x68] sm:$0xff] }
 0x2e2   : > { %v944_v36 = vsel %vm940_vm5, %v939_v34, -inf  ;;  %v1978_v31 = vpack.c.bf16 %v1253_v30, %v1252_v29  ;;  %v1509_v30 = vld [vmem:[%s2245_s29] sm:$0x7] }
 0x2e3   : > { %945 = vmax.xlane.f32.xlu0 %v944_v36  ;;  %v941_v37 = vsel %vm940_vm5, %v938_v35, -inf }
 0x2e4   : > { %942 = vmax.xlane.f32.xlu1 %v941_v37 }
 0x370   : > { %v946_v38 = vpop.xlane.xlu0 %945 }
 0x371   : > { %v948_v39 = vsub.f32 %v939_v34, %v946_v38  ;;  %v943_v40 = vpop.xlane.xlu1 %942  ;;  %v1766_v34 = vld [vmem:[%s2510_s30] ss:$0 sm:$0xff] }
 0x372   : > { %v947_v41 = vsub.f32 %v938_v35, %v943_v40 }
 0x373   : > { %v951_v42 = vmul.f32 1.442695, %v948_v39  ;;  %v1254_v39 = vld [vmem:[%s2509_s5 + $0x70] sm:$0xff] }
 0x374   : > { %v949_v43 = vmul.f32 1.442695, %v947_v41  ;;  %v1343_v41 = vld [vmem:[%s2511_s13 + $0x8] sm:$0xff] }
 0x375   : > { %2055 = vpow2.f32 %v951_v42 }
 0x376   : > { %2057 = vpow2.f32 %v949_v43  ;;  %v1767_v43 = vld [vmem:[%s2512_s22] ss:$0 sm:$0xff] }
 0x37f   : > { %v2056_v44 = vpop.eup %2055 }
 0x380   : > { %v2058_v45 = vpop.eup %2057  ;;  %v956_v46 = vsel %vm940_vm5, %v2056_v44, 0.0 }
 0x381   : > { %957 = vadd.xlane.f32.xlu1 %v956_v46  ;;  %v953_v47 = vsel %vm940_vm5, %v2058_v45, 0.0 }
 0x382   : > { %954 = vadd.xlane.f32.xlu0 %v953_v47 }
 0x398   : > { %2050 = vrot.lane.b32.xlu0 %v2044_v24, %s2114_s26  ;;  %v1249_v24 = vld [vmem:[%s2509_s5 + $0x48] sm:$0xff] }
 0x399   : > { %v1970_v25 = vpack.c.bf16 %v1249_v24, %v1248_v23 }
 0x39c   : > { %1491 = vperm.xlu0 %2043, %v1483_v48  }
 0x40e   : > { %v958_v55 = vpop.xlane.xlu1 %957 }
 0x40f   : > { %2059 = vrcp.f32 %v958_v55  ;;  %v955_v56 = vpop.xlane.xlu0 %954  ;;  %v1770_v55 = vld [vmem:[%s2513_s1] ss:$0 sm:$0xff] }
 0x410   : > { %2061 = vrcp.f32 %v955_v56 }
 0x413   : > { %v2051_v57 = vpop.permute.xlu0 %2050 }
 0x414   : > { %v2053_v58 = vunpack.i.h.bf16 %v2051_v57  ;;  %v2052_v59 = vunpack.i.l.bf16 %v2051_v57 }
 0x416   : > { %v1934_v60 = vpack.c.bf16 %v2053_v58, %v2052_v59 }
 0x418   : > { %1935 = vmatprep.subr.bf16.mxu0 %v1934_v60 }
 0x419   : > { %v2060_v61 = vpop.eup %2059  ;;  %1937 = vmatpush3.bf16.msra.mxu0 %v1934_v60  ;;  %v1771_v60 = vld [vmem:[%s2514_s12] ss:$0 sm:$0xff] }
 0x41a   : > { %v2062_v62 = vpop.eup %2061  ;;  %v962_v0 = vmul.f32 %v2060_v61, %v2056_v44  ;;  %1947 = vmatprep.subr.bf16.mxu0 %v1946_v3 }
 0x41b   : > { %v961_v63 = vmul.f32 %v2062_v62, %v2058_v45 }
 0x41d   : > { %1849 = vmatprep.mubr.msk.f32.mxu0 %vm940_vm5, %v961_v63 }
 0x41e   : > { %1850 = vmatmul.mubr.msk.f32.vlgmr.msra.gmra.mrb[4].mxu0 %vm940_vm5, %v962_v0 }
 0x41f   : > { %1949 = vmatpush3.bf16.msra.mxu0 %v1946_v3  ;;  %v1482_v3 = vld [vmem:[%s2264_s21] sm:$0xff]  ;;  %s2115_s21 = smov 1  }
 0x420   : > { %1951 = vmatprep.subr.bf16.mxu0 %v1950_v8 }
 0x423   : > { %1953 = vmatpush3.bf16.msra.mxu0 %v1950_v8  ;;  %v1492_v8 = vpop.permute.xlu0 %1491 }
 0x4f1   : > { %v1851_v4 = vpop.f32.mrb[4].mxu0 }
 0x4f2   : > { %v1041_v5 = vpop.f32.mrb[5].mxu0 }
 0x4f3   : > { %1860 = vmatprep.mubr.msk.f32.mxu1 %vm758_vm3, %v1041_v5 }
 0x4f4   : > { %1861 = vmatmul.mubr.msk.f32.vlgmr.msra.gmra.mrb[0].mxu1 %vm758_vm3, %v1851_v4 }
 0x4f5   : > { %1957 = vmatpush3.bf16.msra.mxu1 %v1954_v12 }
 0x4f6   : > { %1959 = vmatprep.subr.bf16.mxu1 %v1958_v15 }
 0x4f9   : > { %1961 = vmatpush3.bf16.msra.mxu1 %v1958_v15 }
 0x4fa   : > { %1963 = vmatprep.subr.bf16.mxu1 %v1962_v19 }
 0x4fd   : > { %1965 = vmatpush3.bf16.msra.mxu1 %v1962_v19 }
 0x4fe   : > { %1967 = vmatprep.subr.bf16.mxu1 %v1966_v22 }
 0x501   : > { %1969 = vmatpush3.bf16.msra.mxu1 %v1966_v22 }
 0x502   : > { %1971 = vmatprep.subr.bf16.mxu1 %v1970_v25 }
 0x505   : > { %1973 = vmatpush3.bf16.msra.mxu1 %v1970_v25 }
 0x506   : > { %1975 = vmatprep.subr.bf16.mxu1 %v1974_v28 }
 0x509   : > { %1977 = vmatpush3.bf16.msra.mxu1 %v1974_v28 }
 0x50a   : > { %1979 = vmatprep.subr.bf16.mxu1 %v1978_v31 }
 0x50d   : > { %1981 = vmatpush3.bf16.msra.mxu1 %v1978_v31  ;;  %v1505_v31 = vlaneseq }
 0x5c7   : > { %v1862_v32 = vpop.f32.mrb[0].mxu1 }
 0x5c8   : > { %v1136_v33 = vadd.f32 %v1862_v32, %v2297_v18  ;;  %v1126_v35 = vpop.f32.mrb[1].mxu1  ;;  %v1255_v18 = vld [vmem:[%s2509_s5 + $0x78] sm:$0xff]  ;;  %v1524_v32 = vand.u32 127, %v1505_v31 }
 0x5c9   : > { %v1135_v36 = vadd.f32 %v1126_v35, %v2292_v14  ;;  %v1982_v40 = vpack.c.bf16 %v1255_v18, %v1254_v39  ;;  %v1342_v14 = vld [vmem:[%s2511_s13] sm:$0xff] }
 0x5ca   : > { %v1145_v38 = vadd.f32 %v1766_v34, %v1136_v33  ;;  %v1986_v42 = vpack.c.bf16 %v1343_v41, %v1342_v14  ;;  %v1525_v33 = vcvt.s32.f32 %v1524_v32 }
 0x5cb   : > { %v1144_v37 = vadd.f32 %v1766_v34, %v1135_v36  ;;  %1983 = vmatprep.subr.bf16.mxu1 %v1982_v40 }
 0x5cc   : > { %1985 = vmatpush3.bf16.msra.mxu1 %v1982_v40  ;;  %1987 = vmatprep.subr.bf16.mxu0 %v1986_v42 }
 0x5cd   : > { %1871 = vmatprep.mubr.msk.f32.mxu0 %vm758_vm3, %v1144_v37 }
 0x5ce   : > { %1872 = vmatmul.mubr.msk.f32.vlgmr.msra.gmra.mrb[6].mxu0 %vm758_vm3, %v1145_v38 }
 0x5cf   : > { %1989 = vmatpush3.bf16.msra.mxu0 %v1986_v42 }
 0x5d0   : > { %1991 = vmatprep.subr.bf16.mxu0 %v1990_v52 }
 0x5d3   : > { %1993 = vmatpush3.bf16.msra.mxu0 %v1990_v52 }
 0x6a1   : > { %v1873_v44 = vpop.f32.mrb[6].mxu0 }
 0x6a2   : > { %v1235_v45 = vadd.f32 %v1873_v44, %v1767_v43  ;;  %v1229_v46 = vpop.f32.mrb[7].mxu0  ;;  %v1461_v44 = vld [vmem:[%s2269_s28] sm:$0xff] }
 0x6a3   : > { %v1230_v47 = vadd.f32 %v1767_v43, %v1229_v46  ;;  %v1506_v46 = vshrl.u32 %v1505_v31, 7 }
 0x6a4   : > { %v1239_v49 = vmax.f32 %v1235_v45, 0.0 }
 0x6a5   : > { %v1238_v48 = vmax.f32 %v1230_v47, 0.0 }
 0x6a7   : > { %1906 = vmatprep.mubr.f32.mxu1 %v1238_v48  ;;  %v1507_v48 = vstv %s2093_s24 }
 0x6a8   : > { %1907 = vmatmul.mubr.f32.vlgmr.msra.gmra.mrb[2].mxu1 %v1239_v49  ;;  %v1462_v49 = vld [vmem:[%s2269_s28 + $0x8] sm:$0xff]  ;;  %vm1508_vm10 = vcmp.eq.s32.totalorder %v1506_v46, %v1507_v48 }
 0x77b   : > { %v1908_v53 = vpop.f32.mrb[2].mxu1 }
 0x77c   : > { %v1332_v54 = vadd.f32 %v1908_v53, %v1145_v38  ;;  %v1322_v56 = vpop.f32.mrb[3].mxu1 }
 0x77d   : > { %v1331_v57 = vadd.f32 %v1322_v56, %v1144_v37  ;;  %v1543_v56 = vsub.s32 0, %v1506_v46 }
 0x77e   : > { %v1341_v59 = vadd.f32 %v1770_v55, %v1332_v54 }
 0x77f   : > { %v1340_v58 = vadd.f32 %v1770_v55, %v1331_v57  ;;  %v1540_v57 = vcvt.s32.f32 %v1506_v46 }
 0x781   : > { %1917 = vmatprep.mubr.msk.f32.mxu0 %vm758_vm3, %v1340_v58 }
 0x782   : > { %1918 = vmatmul.mubr.msk.f32.vlgmr.msra.gmra.mrb[8].mxu0 %vm758_vm3, %v1341_v59 }
 0x855   : > { %v1919_v61 = vpop.f32.mrb[8].mxu0 }
 0x856   : > { %v2424_v62 = vadd.f32 %v1919_v61, %v1771_v60  ;;  %v1425_v63 = vpop.f32.mrb[9].mxu0 }
 0x857   : > { %v2426_v0 = vadd.f32 %v1771_v60, %v1425_v63  ;;  %v1550_v63 = vld [vmem:[%s2515_s25] sm:$0xf] }
 0x858   : > { %v1438_v1 = vsel %vm1434_vm6, %v2424_v62, -inf  ;;  %v1495_v9 = vmul.f32 %v1492_v8, %v2424_v62 }
 0x859   : > { %1439 = vmax.xlane.f32.xlu1 %v1438_v1  ;;  %v1435_v2 = vsel %vm1434_vm6, %v2426_v0, -inf }
 0x85a   : > { %v1497_v13 = vsel %vm1434_vm6, %v1495_v9, 0.0 }
 0x85d   : > { %1436 = vmax.xlane.f32.xlu1 %v1435_v2 }
 0x86e   : > { %1486 = vperm.xlu1 %2054, %v1482_v3  }
 0x8e6   : > { %v1440_v4 = vpop.xlane.xlu1 %1439 }
 0x8e7   : > { %v1442_v5 = vsub.f32 %v2424_v62, %v1440_v4 }
 0x8e9   : > { %v1445_v6 = vmul.f32 1.442695, %v1442_v5 }
 0x8ea   : > { %v1437_v7 = vpop.xlane.xlu1 %1436 }
 0x8eb   : > { %2063 = vpow2.f32 %v1445_v6  ;;  %v1441_v11 = vsub.f32 %v2426_v0, %v1437_v7 }
 0x8ed   : > { %v1443_v17 = vmul.f32 1.442695, %v1441_v11 }
 0x8ee   : > { %v1487_v10 = vpop.permute.xlu1 %1486 }
 0x8ef   : > { %v1494_v12 = vmul.f32 %v1487_v10, %v2426_v0  ;;  %2065 = vpow2.f32 %v1443_v17 }
 0x8f1   : > { %v1496_v15 = vsel %vm1434_vm6, %v1494_v12, 0.0 }
 0x8f2   : > { %v1498_v16 = vadd.f32 %v1497_v13, %v1496_v15 }
 0x8f4   : > { %v1499_v19 = vrot.slane %v1498_v16, 4 }
 0x8f5   : > { %v2064_v20 = vpop.eup %2063 }
 0x8f6   : > { %v1500_v21 = vadd.f32 %v1499_v19, %v1498_v16  ;;  %v1450_v22 = vsel %vm1434_vm6, %v2064_v20, 0.0  ;;  %v1471_v20 = vld [vmem:[%s2274_s23] sm:$0x1] }
 0x8f7   : > { %1451 = vadd.xlane.f32.xlu1 %v1450_v22 }
 0x8f8   : > { %v1501_v23 = vrot.slane %v1500_v21, 2 }
 0x8f9   : > { %v2066_v28 = vpop.eup %2065 }
 0x8fa   : > { %v1502_v24 = vadd.f32 %v1501_v23, %v1500_v21  ;;  %v1447_v29 = vsel %vm1434_vm6, %v2066_v28, 0.0 }
 0x8fc   : > { %v1503_v25 = vrot.slane %v1502_v24, 1 }
 0x8fe   : > { %v1504_v26 = vadd.f32 %v1503_v25, %v1502_v24 }
 0x900   : > { %v1527_v27 = vsel %vm1526_vm7, %v1504_v26, -inf }
 0x901   : > { %1528 = vmax.xlane.f32.xlu0 %v1527_v27 }
 0x905   : > { %1448 = vadd.xlane.f32.xlu0 %v1447_v29 }
 0x908   : > { %1513 = vrot.lane.b32.xlu1 %v1509_v30, %s2115_s21 }
 0x91b   : > { %1532 = vrot.lane.b32.xlu0 %v1525_v33, %s2115_s21 }
 0x984   : > { %v1452_v34 = vpop.xlane.xlu1 %1451 }
 0x985   : > { %2067 = vlog2.f32 %v1452_v34 }
 0x988   : > { %v1514_v51 = vpop.permute.xlu1 %1513 }
 0x989   : > { %v1516_v54 = vsel %vm1508_vm10, %v1504_v26, %v1514_v51 }
 0x98e   : > { %v1529_v35 = vpop.xlane.xlu0 %1528 }
 0x98f   : > { %vm1530_vm9 = vcmp.ge.f32.partialorder %v1504_v26, %v1529_v35  ;;  %v2068_v38 = vpop.eup %2067 }
 0x990   : > { %v1456_v40 = vmul.f32 0.6931472, %v2068_v38 }
 0x992   : > { %v1449_v36 = vpop.xlane.xlu0 %1448  ;;  %v1458_v41 = vadd.f32 %v1456_v40, %v1440_v4 }
 0x993   : > { %2069 = vlog2.f32 %v1449_v36 }
 0x994   : > { %v1460_v47 = vsub.f32 %v1458_v41, %v2424_v62 }
 0x996   : > { %v1533_v37 = vpop.permute.xlu0 %1532  ;;  %v1464_v53 = vmul.f32 %v1462_v49, %v1460_v47 }
 0x997   : > { %v1535_v39 = vsel %vm1530_vm9, %v1533_v37, 4.0 }
 0x998   : > { %v1537_v18 = vsel %vm1536_vm8, %v1535_v39, inf  ;;  %v1468_v55 = vsel %vm1434_vm6, %v1464_v53, 0.0 }
 0x999   : > { %1538 = vmin.xlane.f32.xlu1 %v1537_v18 }
 0x99d   : > { %v2070_v14 = vpop.eup %2069 }
 0x99e   : > { %v1454_v42 = vmul.f32 0.6931472, %v2070_v14 }
 0x9a0   : > { %v1457_v43 = vadd.f32 %v1454_v42, %v1437_v7 }
 0x9a2   : > { %v1459_v45 = vsub.f32 %v1457_v43, %v2426_v0  ;;  %v2117_v0 = vmov 0.0  }
 0x9a4   : > { %v1463_v50 = vmul.f32 %v1461_v44, %v1459_v45 }
 0x9a6   : > { %v1465_v52 = vsel %vm1434_vm6, %v1463_v50, 0.0 }
 0x9a7   : > { %1466 = vadd.xlane.f32.xlu0 %v1465_v52 }
 0x9aa   : > { %1518 = vrot.lane.b32.xlu1 %v1516_v54, %s2116_s14 }
 0x9ab   : > { %1469 = vadd.xlane.f32.xlu0 %v1468_v55 }
 0xa26   : > { %v1539_v58 = vpop.xlane.xlu1 %1538 }
 0xa27   : > { %v1544_v59 = vrot.slane %v1539_v58, %v1543_v56 }
 0xa29   : > { %v1545_v60 = vsub.f32 %v1540_v57, %v1544_v59 }
 0xa2a   : > { %v1519_v61 = vpop.permute.xlu1 %1518 }
 0xa2b   : > { %v1546_v62 = vand.u32 2147483647, %v1545_v60  ;;  %1522 = vst.msk [vmem:[%s2245_s29] sm:$0x7] %vm1521_vm11, %v1519_v61 }
 0xa2d   : > { %vm1547_vm12 = vcmp.lt.f32.partialorder %v1546_v62, 0.5 }
 0xa2e   : > { %v1774_v1 = vsel %vm1547_vm12, 1.0, %v2117_v0 }
 0xa2f   : > { %v1551_v2 = vmul.f32 %v1774_v1, %v1550_v63 }
 0xa31   : > { %v1553_v3 = vsel %vm1552_vm13, %v1551_v2, 0.0 }
 0xa32   : > { %v1554_v4 = vrot.slane %v1553_v3, 4 }
 0xa34   : > { %v1555_v5 = vadd.f32 %v1554_v4, %v1553_v3  ;;  %v1467_v6 = vpop.xlane.xlu0 %1466 }
 0xa36   : > { %v1556_v7 = vrot.slane %v1555_v5, 2 }
 0xa38   : > { %v1557_v8 = vadd.f32 %v1556_v7, %v1555_v5  ;;  %v1470_v9 = vpop.xlane.xlu0 %1469 }
 0xa39   : > { %v1472_v10 = vadd.f32 %v1470_v9, %v1467_v6 }
 0xa3a   : > { %v1558_v11 = vrot.slane %v1557_v8, 1 }
 0xa3b   : > { %v1473_v12 = vrot.slane %v1472_v10, 4 }
 0xa3c   : > { %v1559_v13 = vadd.f32 %v1558_v11, %v1557_v8 }
 0xa3d   : > { %v1474_v15 = vadd.f32 %v1473_v12, %v1472_v10 }
 0xa3e   : > { %1561 = vst.msk [vmem:[#allocation2] sm:$0x1] %vm1560_vm14, %v1559_v13 }
 0xa3f   : > { %v1475_v16 = vrot.slane %v1474_v15, 2 }
 0xa41   : > { %v1476_v17 = vadd.f32 %v1475_v16, %v1474_v15 }
 0xa43   : > { %v1477_v19 = vrot.slane %v1476_v17, 1 }
 0xa45   : > { %v1478_v21 = vadd.f32 %v1477_v19, %v1476_v17 }
 0xa47   : > { %v1479_v22 = vadd.f32 %v1478_v21, %v1471_v20 }
 0xa49   : > { %1481 = vst.msk [vmem:[%s2274_s23] sm:$0x1] %vm1480_vm15, %v1479_v22 }
 0xa4a PF: > { %s2516_s29 = sld [smem:[#allocation5_spill]]  ;;  %s2517_s24 = sld [smem:[#allocation3_spill]] }
 0xa4b   : > { %s2518_s25 = sld [smem:[#allocation4_spill]]  ;;  %s2519_s26 = sld [smem:[#allocation6_spill]] }
 0xa4c   : > { %s2520_s27 = sld [smem:[#allocation7_spill]] }
 0xa50   : > { %s28_s28 = sadd.s32 1, %s2516_s29  }
 0xa51   : > { %p25_p8 = scmp.ge.s32.totalorder %s28_s28, 8  }
 0xa53   :  { %27 = sbr.rel (!%p25_p8) target bundleno = 10 (0xa), region = 142 }

</bundles_post_ra>
